<compile_context>
chip_gen: v7x
topology: tpu7x:2x2x1
jax: 0.10.0
libtpu: 0.0.40
codegen_flags: <defaults>
</compile_context>

<pallas_src>
import functools

import jax
import jax.numpy as jnp
import numpy as np
from jax.experimental import pallas as pl
from jax.experimental.pallas import tpu as pltpu

BN_EPS = 1e-5
LANE = 128


def _round_up(x, m):
    return ((x + m - 1) // m) * m


def _vmem_cap_bytes():
    """Generation-adaptive VMEM cap: leave headroom for Mosaic internal scratch."""
    try:
        info = pltpu.get_tpu_info()
        cap = getattr(info, "vmem_capacity_bytes", None)
        if cap:
            # ~75% of physical, never above 100 MiB (v5e/v6e: 128 MiB, v7x: 64 MiB -> 48 MiB).
            return int(min(0.75 * cap, 100 << 20))
    except Exception:
        pass
    return 48 << 20


# ----------------------------------------------------------------------------- kernel


def cnn_decoder_kernel(z_ref, wf_ref, bf_ref, w2_ref, b2_ref, out_ref, *, seq_len, h_pad):
    tb = z_ref.shape[0]
    S = seq_len
    c_pad = out_ref.shape[-1]

    # Fused Linear + Conv1d(k=3,p=1) + BatchNorm (all folded into Wf/bf in the wrapper):
    # one bf16 MXU matmul, f32 accumulation. Columns are already NLC order (col = s*h_pad + o).
    y = jnp.dot(z_ref[...], wf_ref[...], preferred_element_type=jnp.float32)  # (tb, S*h_pad) f32
    y = y + bf_ref[...]                                   # per-(position, channel) bias, f32
    h = jnp.maximum(y, 0.0)                               # ReLU in f32 (v5e VPU has no bf16)
    h = h.reshape(tb * S, h_pad)                          # lane-aligned rows (h_pad % 128 == 0)

    # Conv1d(hidden -> input_dim, kernel_size=1): plain matmul, lane-padded output channels.
    o = jnp.dot(h.astype(jnp.bfloat16), w2_ref[...],
                preferred_element_type=jnp.float32) + b2_ref[...]
    out_ref[...] = o.reshape(tb, S, c_pad)                # lane-dense NLC store


# ------------------------------------------------------------------- parameter folding (once)


def prepare_params(params, *, latent_dim, hidden_dim, input_dim, seq_len):
    """Fold Linear -> Conv1d(k=3,p=1) -> BN(eval) into (Wf, bf); lane-pad hidden & output chans."""
    h2 = hidden_dim // 2
    S = seq_len
    h_pad = _round_up(hidden_dim, LANE)
    c_pad = _round_up(input_dim, LANE)

    # Linear weights back to (latent, channel, seq) / (1, channel, seq); pad seq for conv p=1.
    w1_3d = params['w1'].reshape(latent_dim, h2, S)
    b1_3d = params['b1'].reshape(1, h2, S)
    w1_p = jnp.pad(w1_3d, ((0, 0), (0, 0), (1, 1)))
    b1_p = jnp.pad(b1_3d, ((0, 0), (0, 0), (1, 1)))

    # Compose the Linear with the three conv taps: Wf[l, s, o], bf[s, o].
    wf = jnp.zeros((latent_dim, S, hidden_dim), jnp.float32)
    bf = jnp.zeros((S, hidden_dim), jnp.float32)
    for t in range(3):
        wf = wf + jnp.einsum('lcs,co->lso', w1_p[:, :, t:t + S], params['wc'][t])
        bf = bf + jnp.einsum('cs,co->so', b1_p[0, :, t:t + S], params['wc'][t])
    bf = bf + params['bc'][0][None, :]

    # Fold eval-mode BatchNorm: y' = scale*y + (beta - scale*mean).
    scale = params['gamma'][0] * jax.lax.rsqrt(params['var'][0] + BN_EPS)   # (hidden,)
    shift = params['beta'][0] - scale * params['mean'][0]
    wf = wf * scale[None, None, :]
    bf = bf * scale[None, :] + shift[None, :]

    # Lane-pad hidden channels (zero -> inert after ReLU and zero w2 rows); flatten NLC order.
    wf_p = jnp.zeros((latent_dim, S, h_pad), jnp.float32).at[:, :, :hidden_dim].set(wf)
    bf_p = jnp.zeros((1, S, h_pad), jnp.float32).at[0, :, :hidden_dim].set(bf)
    wf_flat = wf_p.reshape(latent_dim, S * h_pad).astype(jnp.bfloat16)      # bf16 MXU input
    bf_flat = bf_p.reshape(1, S * h_pad)                                    # f32 bias

    # 1x1 conv: zero-pad rows (padded hidden) and cols (lane-dense output channels).
    w2_p = (jnp.zeros((h_pad, c_pad), jnp.float32)
            .at[:hidden_dim, :input_dim].set(params['w2'])).astype(jnp.bfloat16)
    b2_p = jnp.zeros((1, c_pad), jnp.float32).at[:, :input_dim].set(params['b2'])
    return wf_flat, bf_flat, w2_p, b2_p, h_pad, c_pad


# ----------------------------------------------------------------------------- forward


def make_cnn_decoder(params, *, latent_dim, hidden_dim, input_dim, seq_len, batch_tile=256):
    """Build the decoder forward once: parameters are folded/padded here, not per call."""
    assert batch_tile % 8 == 0
    S = seq_len
    wf, bf, w2p, b2p, h_pad, c_pad = prepare_params(
        params, latent_dim=latent_dim, hidden_dim=hidden_dim,
        input_dim=input_dim, seq_len=seq_len)

    kernel = functools.partial(cnn_decoder_kernel, seq_len=S, h_pad=h_pad)

    @jax.jit
    def forward(z):
        B = z.shape[0]
        # Batch tiling; always >= 2 grid steps so the "parallel" axis can use both v7x TCs.
        if B <= batch_tile:
            tb = _round_up(max(1, (B + 1) // 2), 8)
            b_pad = 2 * tb
        else:
            tb = batch_tile
            b_pad = _round_up(B, tb)
        grid = (b_pad // tb,)

        z_p = z if b_pad == B else jnp.pad(z, ((0, b_pad - B), (0, 0)))
        z_p = z_p.astype(jnp.bfloat16)          # halve z DMA bytes; MXU is bf16-native

        # VMEM budget: double-buffered weights + z/out blocks, kernel temporaries, headroom.
        weight_bytes = 2 * (wf.size * 2 + bf.size * 4 + w2p.size * 2 + b2p.size * 4)
        io_bytes = 2 * (tb * latent_dim * 2 + tb * S * c_pad * 4)
        tmp_bytes = tb * S * (h_pad * (4 + 4 + 2) + c_pad * 4)
        vmem_limit = int(min(_vmem_cap_bytes(),
                             max(32 << 20, weight_bytes + io_bytes + tmp_bytes + (8 << 20))))

        out_nlc = pl.pallas_call(
            kernel,
            out_shape=jax.ShapeDtypeStruct((b_pad, S, c_pad), jnp.float32),
            grid=grid,
            in_specs=[
                pl.BlockSpec((tb, latent_dim), lambda i: (i, 0)),   # z: batch-tiled
                pl.BlockSpec(wf.shape, lambda i: (0, 0)),           # fused weights: resident
                pl.BlockSpec(bf.shape, lambda i: (0, 0)),
                pl.BlockSpec(w2p.shape, lambda i: (0, 0)),
                pl.BlockSpec(b2p.shape, lambda i: (0, 0)),
            ],
            out_specs=pl.BlockSpec((tb, S, c_pad), lambda i: (i, 0, 0)),
            compiler_params=pltpu.CompilerParams(
                dimension_semantics=("parallel",),
                vmem_limit_bytes=vmem_limit),
        )(z_p, wf, bf, w2p, b2p)

        # Drop padding and return to PyTorch NCL layout outside the kernel (lane-dense stores).
        return jnp.transpose(out_nlc[:B, :, :input_dim], (0, 2, 1))

    return forward


# ----------------------------------------------------------------------------- reference


def reference_forward(z, params, *, hidden_dim, input_dim, seq_len):
    """Pure-JAX f32 reference (mirrors the PyTorch forward with un-folded parameters)."""
    h2 = hidden_dim // 2
    B = z.shape[0]
    y = z @ params['w1'] + params['b1']                        # (B, seq*h2)
    y = y.reshape(B, h2, seq_len)                              # NCL
    y = jnp.pad(y, ((0, 0), (0, 0), (1, 1)))
    conv_w = jnp.transpose(params['wc'], (2, 1, 0))            # back to (hidden, h2, 3)
    h = jnp.zeros((B, hidden_dim, seq_len), jnp.float32)
    for t in range(3):
        h = h + jnp.einsum('oc,bcs->bos', conv_w[:, :, t], y[:, :, t:t + seq_len])
    h = h + params['bc'][0][None, :, None]
    h = (h - params['mean'][0][None, :, None]) * jax.lax.rsqrt(params['var'][0][None, :, None] + BN_EPS) \
        * params['gamma'][0][None, :, None] + params['beta'][0][None, :, None]
    h = jnp.maximum(h, 0.0)
    o = jnp.einsum('do,bos->bds', params['w2'].T, h) + params['b2'][0][None, :, None]
    return o


def init_params(key, *, latent_dim, hidden_dim, input_dim, seq_len):
    h2 = hidden_dim // 2
    ks = jax.random.split(key, 10)
    # nn.Linear(latent_dim, seq_len*h2): torch weight (out, in) -> stored transposed (in, out)
    w1 = 0.1 * jax.random.normal(ks[0], (latent_dim, seq_len * h2), jnp.float32)
    b1 = 0.1 * jax.random.normal(ks[1], (1, seq_len * h2), jnp.float32)
    # Conv1d(h2, hidden, k=3): torch weight (hidden, h2, 3) -> stored as (3, h2, hidden)
    conv_w = 0.1 * jax.random.normal(ks[2], (hidden_dim, h2, 3), jnp.float32)
    wc = jnp.transpose(conv_w, (2, 1, 0))
    bc = 0.1 * jax.random.normal(ks[3], (1, hidden_dim), jnp.float32)
    # BatchNorm1d(hidden): non-trivial running stats to exercise the BN folding
    gamma = 1.0 + 0.1 * jax.random.normal(ks[4], (1, hidden_dim), jnp.float32)
    beta = 0.1 * jax.random.normal(ks[5], (1, hidden_dim), jnp.float32)
    mean = 0.1 * jax.random.normal(ks[6], (1, hidden_dim), jnp.float32)
    var = 1.0 + 0.1 * jnp.abs(jax.random.normal(ks[7], (1, hidden_dim), jnp.float32))
    # Conv1d(hidden, input_dim, k=1): torch weight (input_dim, hidden, 1) -> stored (hidden, input_dim)
    w2 = 0.1 * jax.random.normal(ks[8], (hidden_dim, input_dim), jnp.float32)
    b2 = 0.1 * jax.random.normal(ks[9], (1, input_dim), jnp.float32)
    return dict(w1=w1, b1=b1, wc=wc, bc=bc, gamma=gamma, beta=beta,
                mean=mean, var=var, w2=w2, b2=b2)


if __name__ == "__main__":
    B, latent_dim, hidden_dim, input_dim, seq_len = 2, 16, 32, 8, 8

    key = jax.random.PRNGKey(0)
    kz, kp = jax.random.split(key)
    z = jax.random.normal(kz, (B, latent_dim), jnp.float32)
    params = init_params(kp, latent_dim=latent_dim, hidden_dim=hidden_dim,
                         input_dim=input_dim, seq_len=seq_len)

    forward = make_cnn_decoder(params, latent_dim=latent_dim, hidden_dim=hidden_dim,
                               input_dim=input_dim, seq_len=seq_len)
    out = jax.block_until_ready(forward(z))

    ref = reference_forward(z, params, hidden_dim=hidden_dim,
                            input_dim=input_dim, seq_len=seq_len)
    assert out.shape == (B, input_dim, seq_len), out.shape
    # bf16 MXU inputs -> looser tolerance than the f32 reference.
    np.testing.assert_allclose(np.asarray(out), np.asarray(ref), rtol=2e-2, atol=2e-2)

    print("KERNEL_OK")
</pallas_src>

<mosaic_0001>
module attributes {stable_mosaic.version = 11 : i64} {
  func.func @cnn_decoder_kernel(%arg0: i32, %arg1: memref<8x16xbf16, #tpu.memory_space<vmem>>, %arg2: memref<16x1024xbf16, #tpu.memory_space<vmem>>, %arg3: memref<1x1024xf32, #tpu.memory_space<vmem>>, %arg4: memref<128x128xbf16, #tpu.memory_space<vmem>>, %arg5: memref<1x128xf32, #tpu.memory_space<vmem>>, %arg6: memref<8x8x128xf32, #tpu.memory_space<vmem>>) attributes {dimension_semantics = [#tpu.dimension_semantics<parallel>], iteration_bounds = array<i64: 2>, scalar_prefetch = 0 : i64, scratch_operands = 0 : i64, tpu.core_type = #tpu.core_type<tc>, window_params = [{transform_indices = @transform_0, window_bounds = array<i64: 8, 16>}, {pipeline_mode = #tpu.pipeline_mode<synchronous>, transform_indices = @transform_1, window_bounds = array<i64: 16, 1024>}, {pipeline_mode = #tpu.pipeline_mode<synchronous>, transform_indices = @transform_2, window_bounds = array<i64: 1, 1024>}, {pipeline_mode = #tpu.pipeline_mode<synchronous>, transform_indices = @transform_3, window_bounds = array<i64: 128, 128>}, {pipeline_mode = #tpu.pipeline_mode<synchronous>, transform_indices = @transform_4, window_bounds = array<i64: 1, 128>}, {transform_indices = @transform_5, window_bounds = array<i64: 8, 8, 128>}]} {
    %c0 = arith.constant 0 : index
    %c0_0 = arith.constant 0 : index
    %0 = vector.load %arg1[%c0, %c0_0] : memref<8x16xbf16, #tpu.memory_space<vmem>>, vector<8x16xbf16>
    %c0_1 = arith.constant 0 : index
    %c0_2 = arith.constant 0 : index
    %1 = vector.load %arg2[%c0_1, %c0_2] : memref<16x1024xbf16, #tpu.memory_space<vmem>>, vector<16x1024xbf16>
    %cst = arith.constant dense<0.000000e+00> : vector<8x1024xf32>
    %2 = tpu.matmul %0, %1, %cst {dimension_numbers = #tpu.dot_dimension_numbers<[1], [0], [0], [1], [0, 0, 1, 1], [], []>} : vector<8x16xbf16>, vector<16x1024xbf16>, vector<8x1024xf32> -> vector<8x1024xf32>
    %c0_3 = arith.constant 0 : index
    %c0_4 = arith.constant 0 : index
    %3 = vector.load %arg3[%c0_3, %c0_4] : memref<1x1024xf32, #tpu.memory_space<vmem>>, vector<1x1024xf32>
    %4 = vector.broadcast %3 : vector<1x1024xf32> to vector<8x1024xf32>
    %5 = arith.addf %2, %4 : vector<8x1024xf32>
    %cst_5 = arith.constant 0.000000e+00 : f32
    %6 = vector.broadcast %cst_5 : f32 to vector<8x1024xf32>
    %7 = arith.maximumf %5, %6 : vector<8x1024xf32>
    %8 = vector.shape_cast %7 : vector<8x1024xf32> to vector<64x128xf32>
    %9 = arith.truncf %8 : vector<64x128xf32> to vector<64x128xbf16>
    %c0_6 = arith.constant 0 : index
    %c0_7 = arith.constant 0 : index
    %10 = vector.load %arg4[%c0_6, %c0_7] : memref<128x128xbf16, #tpu.memory_space<vmem>>, vector<128x128xbf16>
    %cst_8 = arith.constant dense<0.000000e+00> : vector<64x128xf32>
    %11 = tpu.matmul %9, %10, %cst_8 {dimension_numbers = #tpu.dot_dimension_numbers<[1], [0], [0], [1], [0, 0, 1, 1], [], []>} : vector<64x128xbf16>, vector<128x128xbf16>, vector<64x128xf32> -> vector<64x128xf32>
    %c0_9 = arith.constant 0 : index
    %c0_10 = arith.constant 0 : index
    %12 = vector.load %arg5[%c0_9, %c0_10] : memref<1x128xf32, #tpu.memory_space<vmem>>, vector<1x128xf32>
    %13 = vector.broadcast %12 : vector<1x128xf32> to vector<64x128xf32>
    %14 = arith.addf %11, %13 : vector<64x128xf32>
    %15 = vector.shape_cast %14 : vector<64x128xf32> to vector<8x8x128xf32>
    %c0_11 = arith.constant 0 : index
    %c0_12 = arith.constant 0 : index
    %c0_13 = arith.constant 0 : index
    %16 = vector.load %arg6[%c0_11, %c0_12, %c0_13] : memref<8x8x128xf32, #tpu.memory_space<vmem>>, vector<8x8x128xf32>
    tpu.vector_store %arg6[%c0_11, %c0_12, %c0_13], %15 {strides = array<i32>} : memref<8x8x128xf32, #tpu.memory_space<vmem>>, vector<8x8x128xf32>,
    return
  }
  func.func @transform_0(%arg0: i32) -> (i32, i32) {
    %c0_i32 = arith.constant 0 : i32
    %c0_i32_0 = arith.constant 0 : i32
    return %arg0, %c0_i32 : i32, i32
  }
  func.func @transform_1(%arg0: i32) -> (i32, i32) {
    %c0_i32 = arith.constant 0 : i32
    %c0_i32_0 = arith.constant 0 : i32
    %c0_i32_1 = arith.constant 0 : i32
    return %c0_i32, %c0_i32_0 : i32, i32
  }
  func.func @transform_2(%arg0: i32) -> (i32, i32) {
    %c0_i32 = arith.constant 0 : i32
    %c0_i32_0 = arith.constant 0 : i32
    %c0_i32_1 = arith.constant 0 : i32
    return %c0_i32, %c0_i32_0 : i32, i32
  }
  func.func @transform_3(%arg0: i32) -> (i32, i32) {
    %c0_i32 = arith.constant 0 : i32
    %c0_i32_0 = arith.constant 0 : i32
    %c0_i32_1 = arith.constant 0 : i32
    return %c0_i32, %c0_i32_0 : i32, i32
  }
  func.func @transform_4(%arg0: i32) -> (i32, i32) {
    %c0_i32 = arith.constant 0 : i32
    %c0_i32_0 = arith.constant 0 : i32
    %c0_i32_1 = arith.constant 0 : i32
    return %c0_i32, %c0_i32_0 : i32, i32
  }
  func.func @transform_5(%arg0: i32) -> (i32, i32, i32) {
    %c0_i32 = arith.constant 0 : i32
    %c0_i32_0 = arith.constant 0 : i32
    %c0_i32_1 = arith.constant 0 : i32
    return %arg0, %c0_i32, %c0_i32_0 : i32, i32, i32
  }
}

</mosaic_0001>

<bundles_post_ra>
// kernel: forward.1
= control target key start
LH: loop header
LB: loop body
LE: loop exit
PB: predicated region body
PF: predicated region fallthrough
CT: control target
= control target key end

     0   :  { %s972_s18 = smov 0   ;;  %s1052_s0 = inlined_call_operand.vmem [shape: bf16[16,16], index: 0, kind: input, shape index: {}]   ;;  %s1053_s1 = inlined_call_operand.vmem [shape: bf16[16,1024], index: 1, kind: input, shape index: {}]   ;;  %s1054_s2 = inlined_call_operand.vmem [shape: f32[1,1024], index: 2, kind: input, shape index: {}]   ;;  %s1055_s3 = inlined_call_operand.vmem [shape: bf16[128,128], index: 3, kind: input, shape index: {}]   ;;  %s1056_s4 = inlined_call_operand.vmem [shape: f32[1,128], index: 4, kind: input, shape index: {}]   ;;  %s1057_s5 = inlined_call_operand.vmem [shape: f32[16,8,128], index: 5, kind: output, shape index: {}]  }
   0x1 LB: > { %s978_s19 = sadd.s32 4294967295, %s938_s18   ;;  %p851_p0 = scmp.ge.s32.totalorder %s938_s18, 1  ;;  %s938_s18 = sphi %s972_s18, %s15_s18  }
   0x2   : > { %p186_p1 = scmp.lt.s32.totalorder %s938_s18, 3 }
   0x4   : > { %p187_p2 = pnand %p851_p0, %p186_p1 }
   0x5   : > { %v225_v0 = vld [vmem:[%s1053_s1] sm:$0xff] (!%p187_p2)  ;;  %p213_p3 = scmp.lt.s32.totalorder (!%p187_p2), %s978_s19, 1  ;;  %v226_v2 = vld [vmem:[%s1053_s1 + $0x8] sm:$0xff] (!%p187_p2)  ;;  %v940_v5 = vmov (!%p187_p2), 0   ;;  %v227_v8 = vld [vmem:[%s1053_s1 + $0x10] sm:$0xff] (!%p187_p2)  ;;  %vm315_vm0 = vcmask (!%p187_p2), 130048   ;;  %v235_v26 = vlaneseq (!%p187_p2) }
   0x6   : > { %190 = sbr.rel (%p187_p2) target bundleno = 498 (0x1f2), region = 40  ;;  %v229_v1 = vld [vmem:[%s1053_s1 + $0x20] sm:$0xff] (!%p187_p2)  ;;  %351 = vmatprep.mubr.bf16.mxu1 (!%p187_p2), %v940_v5  ;;  %v230_v6 = vld [vmem:[%s1053_s1 + $0x28] sm:$0xff] (!%p187_p2)  ;;  %v231_v9 = vld [vmem:[%s1053_s1 + $0x30] sm:$0xff] (!%p187_p2)  ;;  %v941_v42 = vmov (!%p187_p2), 1966171168  }
   0x7   : > { %v856_v3 = vcombine.high (!%p187_p2), %v225_v0, %v229_v1  ;;  %v855_v4 = vcombine.low (!%p187_p2), %v225_v0, %v229_v1  ;;  %v858_v7 = vcombine.high (!%p187_p2), %v226_v2, %v230_v6  ;;  %v857_v10 = vcombine.low (!%p187_p2), %v226_v2, %v230_v6  ;;  %v228_v13 = vld [vmem:[%s1053_s1 + $0x18] sm:$0xff] (!%p187_p2)  ;;  %v924_v18 = vld [vmem:[%s1055_s3] sm:$0xff] (!%p187_p2)   ;;  %v925_v19 = vld [vmem:[%s1055_s3 + $0x8] sm:$0xff] (!%p187_p2)  }
   0x8   : > { %v860_v11 = vcombine.high (!%p187_p2), %v227_v8, %v231_v9  ;;  %v232_v14 = vld [vmem:[%s1053_s1 + $0x38] sm:$0xff] (!%p187_p2)  ;;  %v859_v15 = vcombine.low (!%p187_p2), %v227_v8, %v231_v9  ;;  %890 = vmatprep.subr.bf16.mxu0 (!%p187_p2), %v924_v18  ;;  %v926_v20 = vld [vmem:[%s1055_s3 + $0x10] sm:$0xff] (!%p187_p2)   ;;  %v928_v22 = vld [vmem:[%s1055_s3 + $0x20] sm:$0xff] (!%p187_p2)   ;;  %v236_v27 = vshrl.u32 (!%p187_p2), %v235_v26, 7  ;;  %v508_v43 = vunpack.c.l.s4 (!%p187_p2), %v941_v42 }
   0x9   : > { %319 = vmatprep.subr.bf16.mxu1 (!%p187_p2), %v856_v3  ;;  %v862_v16 = vcombine.high (!%p187_p2), %v228_v13, %v232_v14  ;;  %v861_v17 = vcombine.low (!%p187_p2), %v228_v13, %v232_v14  ;;  %891 = vmatpush3.bf16.msra.mxu0 (!%p187_p2), %v924_v18  ;;  %v927_v21 = vld [vmem:[%s1055_s3 + $0x18] sm:$0xff] (!%p187_p2)   ;;  %v929_v23 = vld [vmem:[%s1055_s3 + $0x28] sm:$0xff] (!%p187_p2)   ;;  %v930_v24 = vld [vmem:[%s1055_s3 + $0x30] sm:$0xff] (!%p187_p2)  }
   0xa   : > { %320 = vmatpush1.bf16.msra.mxu1 (!%p187_p2), %v855_v4  ;;  %892 = vmatprep.subr.bf16.mxu0 (!%p187_p2), %v925_v19  ;;  %v931_v25 = vld [vmem:[%s1055_s3 + $0x38] sm:$0xff] (!%p187_p2)   ;;  %v237_v28 = vsub.s32 (!%p187_p2), 0, %v236_v27  ;;  %v233_v29 = vld [vmem:[%s1054_s2] sm:$0xff] (!%p187_p2)  ;;  %v241_v30 = vsub.s32 (!%p187_p2), 1, %v236_v27  ;;  %v245_v36 = vsub.s32 (!%p187_p2), 2, %v236_v27  ;;  %v249_v39 = vsub.s32 (!%p187_p2), 3, %v236_v27 }
   0xb   : > { %360 = vmatprep.subr.bf16.mxu1 (!%p187_p2), %v858_v7  ;;  %v509_v49 = vunpack.c.0.s8 (!%p187_p2), %v508_v43  ;;  %v253_v53 = vsub.s32 (!%p187_p2), 4, %v236_v27  ;;  %v257_v56 = vsub.s32 (!%p187_p2), 5, %v236_v27  ;;  %v261_v8 = vsub.s32 (!%p187_p2), 6, %v236_v27 }
   0xc   : > { %v238_v31 = vrot.slane (!%p187_p2), %v233_v29, %v237_v28  ;;  %v242_v32 = vrot.slane (!%p187_p2), %v233_v29, %v241_v30  ;;  %v246_v45 = vrot.slane (!%p187_p2), %v233_v29, %v245_v36  ;;  %v250_v48 = vrot.slane (!%p187_p2), %v233_v29, %v249_v39 }
   0xd   : > { %s214_s28 = scalar_select %p213_p3, %s978_s19, 1  ;;  %893 = vmatpush3.bf16.msra.mxu0 %v925_v19  ;;  %v512_v59 = vsub.s32 %v509_v49, %v236_v27  ;;  %v254_v61 = vrot.slane %v233_v29, %v253_v53  ;;  %v258_v0 = vrot.slane %v233_v29, %v257_v56  ;;  %v265_v9 = vsub.s32 7, %v236_v27 }
   0xe   : > { %894 = vmatprep.subr.bf16.mxu0 %v926_v20  ;;  %v262_v19 = vrot.slane %v233_v29, %v261_v8 }
   0xf   : > { %s852_s8 = sshll.u32 %s214_s28, 2 }
  0x10   : > { %s216_s11 = scalar_lea.vmem %s1052_s0, %s852_s8 }
  0x11   : > { %v224_v12 = vld [vmem:[%s216_s11] sm:$0xf]  ;;  %895 = vmatpush3.bf16.msra.mxu0 %v926_v20  ;;  %s853_s11 = sshll.u32 %s978_s19, 3 }
  0x12   : > { %863 = vmatmul.mubr.msk.bf16.vlgmr.msra.gmra.mrb[0].mxu1 %vm315_vm0, %v224_v12  ;;  %896 = vmatprep.subr.bf16.mxu0 %v927_v21  ;;  %p218_p4 = scmp.lt.s32.totalorder %s853_s11, 15 }
  0x13   : > { %361 = vmatpush1.bf16.msra.mxu1 %v857_v10  ;;  %392 = vmatprep.mubr.bf16.mxu1 %v940_v5 }
  0x14   : > { %401 = vmatprep.subr.bf16.mxu1 %v860_v11  ;;  %s1059_s11 = smov (!%p218_p4, %s853_s11), 15 }
  0x15   : > { %897 = vmatpush3.bf16.msra.mxu0 %v927_v21  ;;  %s854_s12 = sshll.u32 %s1059_s11, 3 }
  0x16   : > { %898 = vmatprep.subr.bf16.mxu0 %v928_v22  ;;  %s221_s17 = scalar_lea.vmem %s1057_s5, %s854_s12 }
  0x19   : > { %899 = vmatpush3.bf16.msra.mxu0 %v928_v22  ;;  %v266_v22 = vrot.slane %v233_v29, %v265_v9 }
  0x1a   : > { %864 = vmatmul.mubr.msk.bf16.vlgmr.msra.gmra.mrb[4].mxu1 %vm315_vm0, %v224_v12  ;;  %900 = vmatprep.subr.bf16.mxu0 %v929_v23 }
  0x1b   : > { %402 = vmatpush1.bf16.msra.mxu1 %v859_v15  ;;  %433 = vmatprep.mubr.bf16.mxu1 %v940_v5 }
  0x1c   : > { %442 = vmatprep.subr.bf16.mxu1 %v862_v16 }
  0x1d   : > { %901 = vmatpush3.bf16.msra.mxu0 %v929_v23 }
  0x1e   : > { %902 = vmatprep.subr.bf16.mxu0 %v930_v24 }
  0x21   : > { %903 = vmatpush3.bf16.msra.mxu0 %v930_v24 }
  0x22   : > { %865 = vmatmul.mubr.msk.bf16.vlgmr.msra.gmra.mrb[8].mxu1 %vm315_vm0, %v224_v12  ;;  %904 = vmatprep.subr.bf16.mxu0 %v931_v25 }
  0x23   : > { %443 = vmatpush1.bf16.msra.mxu1 %v861_v17  ;;  %474 = vmatprep.mubr.bf16.mxu1 %v940_v5 }
  0x25   : > { %905 = vmatpush3.bf16.msra.mxu0 %v931_v25 }
  0x2a   : > { %866 = vmatmul.mubr.msk.bf16.vlgmr.msra.gmra.mrb[12].mxu1 %vm315_vm0, %v224_v12 }
  0xe5   : > { %v353_v33 = vpop.f32.mrb[0].mxu1 }
  0xe6   : > { %v354_v34 = vadd.f32 %v353_v33, %v238_v31  ;;  %v355_v35 = vpop.f32.mrb[1].mxu1 }
  0xe7   : > { %v356_v37 = vadd.f32 %v355_v35, %v242_v32  ;;  %v357_v38 = vpop.f32.mrb[2].mxu1 }
  0xe8   : > { %v483_v40 = vmax.f32 %v354_v34, 0.0  ;;  %v358_v41 = vpop.f32.mrb[3].mxu1 }
  0xe9   : > { %v484_v44 = vmax.f32 %v356_v37, 0.0 }
  0xeb   : > { %v499_v46 = vcombine.low %v483_v40, %v484_v44  ;;  %v500_v47 = vcombine.high %v483_v40, %v484_v44 }
  0xed   : > { %v394_v50 = vpop.f32.mrb[4].mxu1  ;;  %v513_v1 = vrot.slane %v499_v46, %v512_v59  ;;  %v520_v2 = vrot.slane %v500_v47, %v512_v59 }
  0xee   : > { %v395_v51 = vadd.f32 %v394_v50, %v246_v45  ;;  %v396_v52 = vpop.f32.mrb[5].mxu1 }
  0xef   : > { %v397_v54 = vadd.f32 %v396_v52, %v250_v48  ;;  %v398_v55 = vpop.f32.mrb[6].mxu1 }
  0xf0   : > { %v485_v57 = vmax.f32 %v395_v51, 0.0  ;;  %v399_v58 = vpop.f32.mrb[7].mxu1 }
  0xf1   : > { %v486_v60 = vmax.f32 %v397_v54, 0.0 }
  0xf3   : > { %v501_v62 = vcombine.low %v485_v57, %v486_v60  ;;  %v502_v63 = vcombine.high %v485_v57, %v486_v60 }
  0xf5   : > { %v527_v3 = vrot.slane %v501_v62, %v512_v59  ;;  %v534_v4 = vrot.slane %v502_v63, %v512_v59  ;;  %v435_v5 = vpop.f32.mrb[8].mxu1 }
  0xf6   : > { %v436_v6 = vadd.f32 %v435_v5, %v254_v61  ;;  %v437_v7 = vpop.f32.mrb[9].mxu1 }
  0xf7   : > { %v565_v10 = vcombine.low %v520_v2, %v534_v4  ;;  %v566_v11 = vcombine.high %v520_v2, %v534_v4  ;;  %v438_v12 = vadd.f32 %v437_v7, %v258_v0  ;;  %v439_v13 = vpop.f32.mrb[10].mxu1  ;;  %v563_v14 = vcombine.low %v513_v1, %v527_v3 }
  0xf8   : > { %v487_v15 = vmax.f32 %v436_v6, 0.0  ;;  %v440_v16 = vpop.f32.mrb[11].mxu1  ;;  %v564_v17 = vcombine.high %v513_v1, %v527_v3 }
  0xf9   : > { %v488_v18 = vmax.f32 %v438_v12, 0.0  ;;  %v577_v42 = vrot.slane %v563_v14, %v512_v59  ;;  %v584_v47 = vrot.slane %v565_v10, %v512_v59  ;;  %v598_v48 = vrot.slane %v566_v11, %v512_v59 }
  0xfa   : > { %v591_v29 = vrot.slane %v564_v17, %v512_v59 }
  0xfb   : > { %v503_v20 = vcombine.low %v487_v15, %v488_v18  ;;  %v504_v21 = vcombine.high %v487_v15, %v488_v18 }
  0xfd   : > { %v476_v23 = vpop.f32.mrb[12].mxu1  ;;  %v541_v34 = vrot.slane %v503_v20, %v512_v59  ;;  %v548_v35 = vrot.slane %v504_v21, %v512_v59 }
  0xfe   : > { %v477_v24 = vadd.f32 %v476_v23, %v262_v19  ;;  %v478_v25 = vpop.f32.mrb[13].mxu1 }
  0xff   : > { %v479_v26 = vadd.f32 %v478_v25, %v266_v22  ;;  %v480_v28 = vpop.f32.mrb[14].mxu1 }
 0x100   : > { %v489_v30 = vmax.f32 %v477_v24, 0.0  ;;  %v481_v27 = vpop.f32.mrb[15].mxu1 }
 0x101   : > { %v490_v31 = vmax.f32 %v479_v26, 0.0 }
 0x103   : > { %v505_v32 = vcombine.low %v489_v30, %v490_v31  ;;  %v506_v33 = vcombine.high %v489_v30, %v490_v31 }
 0x105   : > { %v555_v36 = vrot.slane %v505_v32, %v512_v59  ;;  %v562_v37 = vrot.slane %v506_v33, %v512_v59 }
 0x107   : > { %v569_v38 = vcombine.low %v548_v35, %v562_v37  ;;  %v570_v39 = vcombine.high %v548_v35, %v562_v37  ;;  %v567_v40 = vcombine.low %v541_v34, %v555_v36  ;;  %v568_v41 = vcombine.high %v541_v34, %v555_v36 }
 0x109   : > { %v605_v43 = vrot.slane %v567_v40, %v512_v59  ;;  %v619_v44 = vrot.slane %v568_v41, %v512_v59  ;;  %v612_v45 = vrot.slane %v569_v38, %v512_v59  ;;  %v626_v46 = vrot.slane %v570_v39, %v512_v59  ;;  %v867_v59 = vld [vmem:[%s1056_s4] ss:$0 sm:$0xff] }
 0x10b   : > { %v627_v49 = vcombine.low %v577_v42, %v605_v43  ;;  %v631_v50 = vcombine.low %v591_v29, %v619_v44  ;;  %v628_v51 = vcombine.high %v577_v42, %v605_v43  ;;  %v632_v52 = vcombine.high %v591_v29, %v619_v44 }
 0x10c   : > { %v629_v53 = vcombine.low %v584_v47, %v612_v45  ;;  %v633_v54 = vcombine.low %v598_v48, %v626_v46  ;;  %v630_v55 = vcombine.high %v584_v47, %v612_v45  ;;  %v634_v56 = vcombine.high %v598_v48, %v626_v46 }
 0x10d   : > { %v643_v57 = vpack.c.bf16 %v631_v50, %v627_v49  ;;  %v644_v58 = vpack.c.bf16 %v632_v52, %v628_v51 }
 0x10e   : > { %v645_v60 = vpack.c.bf16 %v633_v54, %v629_v53  ;;  %v646_v61 = vpack.c.bf16 %v634_v56, %v630_v55 }
 0x10f   : > { %906 = vmatprep.mubr.bf16.mxu0 %v643_v57 }
 0x110   : > { %907 = vmatmul.mubr.bf16.vlgmr.msra.gmra.mrb[0].mxu0 %v644_v58 }
 0x111   : > { %910 = vmatprep.mubr.bf16.mxu0 %v645_v60 }
 0x118   : > { %911 = vmatmul.mubr.bf16.gmra.mrb[4].mxu0 %v646_v61 }
 0x1e3   : > { %v908_v62 = vpop.f32.mrb[0].mxu0 }
 0x1e4   : > { %v761_v63 = vadd.f32 %v908_v62, %v867_v59  ;;  %v752_v0 = vpop.f32.mrb[1].mxu0 }
 0x1e5   : > { %v753_v1 = vadd.f32 %v867_v59, %v752_v0  ;;  %v909_v2 = vpop.f32.mrb[2].mxu0 }
 0x1e6   : > { %785 = vst [vmem:[%s221_s17 + $0x10] sm:$0xff] %v761_v63  ;;  %v764_v3 = vadd.f32 %v909_v2, %v867_v59  ;;  %v755_v4 = vpop.f32.mrb[3].mxu0 }
 0x1e7   : > { %783 = vst [vmem:[%s221_s17] sm:$0xff] %v753_v1  ;;  %v756_v5 = vadd.f32 %v867_v59, %v755_v4 }
 0x1e8   : > { %786 = vst [vmem:[%s221_s17 + $0x18] sm:$0xff] %v764_v3 }
 0x1e9   : > { %784 = vst [vmem:[%s221_s17 + $0x8] sm:$0xff] %v756_v5 }
 0x1eb   : > { %v912_v6 = vpop.f32.mrb[4].mxu0 }
 0x1ec   : > { %v777_v7 = vadd.f32 %v912_v6, %v867_v59  ;;  %v768_v8 = vpop.f32.mrb[5].mxu0 }
 0x1ed   : > { %v769_v9 = vadd.f32 %v867_v59, %v768_v8  ;;  %v913_v10 = vpop.f32.mrb[6].mxu0 }
 0x1ee   : > { %789 = vst [vmem:[%s221_s17 + $0x30] sm:$0xff] %v777_v7  ;;  %v780_v11 = vadd.f32 %v913_v10, %v867_v59  ;;  %v771_v12 = vpop.f32.mrb[7].mxu0 }
 0x1ef   : > { %787 = vst [vmem:[%s221_s17 + $0x20] sm:$0xff] %v769_v9  ;;  %v772_v13 = vadd.f32 %v867_v59, %v771_v12 }
 0x1f0   : > { %790 = vst [vmem:[%s221_s17 + $0x38] sm:$0xff] %v780_v11 }
 0x1f1   : > { %788 = vst [vmem:[%s221_s17 + $0x28] sm:$0xff] %v772_v13 }
 0x1f2 PF: > { %s15_s18 = sadd.s32 1, %s938_s18  }
 0x1f3   : > { %p12_p5 = scmp.ge.s32.totalorder %s15_s18, 4  }
 0x1f5   :  { %14 = sbr.rel (!%p12_p5) target bundleno = 1 (0x1), region = 70 }

</bundles_post_ra>
